<compile_context>
chip_gen: v5e
topology: v5e:2x2
jax: 0.10.0
libtpu: 0.0.40
codegen_flags: <defaults>
</compile_context>

<pallas_src>
import jax
import jax.numpy as jnp
from jax.experimental import pallas as pl
from jax.experimental.pallas import tpu as pltpu

_MiB = 1024 * 1024


# ---------------------------------------------------------------------------
# Best-effort hardware queries (conservative fallbacks)
# ---------------------------------------------------------------------------
def _vmem_capacity_bytes():
    try:
        return int(pltpu.get_tpu_info().vmem_capacity_bytes)
    except Exception:
        return 64 * _MiB                        # v7x-conservative fallback


def _num_tensorcores():
    try:
        kind = jax.devices()[0].device_kind.lower()
    except Exception:
        return 1
    return 2 if any(t in kind for t in ("v4", "v5p", "v7")) else 1


# ---------------------------------------------------------------------------
# Kernels
# ---------------------------------------------------------------------------
def _highway_layer(x, w, b, S):
    """One highway layer. x: (B, S); w: (S, 3S) packed [gate|nl|lin]; b: (1, 3S)."""
    y = jnp.dot(x.astype(w.dtype), w, preferred_element_type=jnp.float32) + b
    gate = jax.nn.sigmoid(y[:, :S])               # EUP
    nonlinear = jnp.maximum(y[:, S:2 * S], 0.0)   # f = ReLU
    linear = y[:, 2 * S:]
    # lin + g*(nl - lin) == g*nl + (1-g)*lin, one fewer VPU multiply.
    return linear + gate * (nonlinear - linear)


def highway_kernel_nogrid(x_ref, w_ref, b_ref, o_ref):
    """All layers in one invocation; whole packed weight stack resident in VMEM."""
    S = o_ref.shape[-1]
    L = w_ref.shape[0]
    x = x_ref[...].astype(jnp.float32)
    for l in range(L):                            # static unroll, L is small
        x = _highway_layer(x, w_ref[l], b_ref[l], S)
    o_ref[...] = x.astype(o_ref.dtype)


def highway_kernel_grid(x_ref, w_ref, b_ref, o_ref, xbuf):
    """grid = (batch tiles 'parallel', layers 'arbitrary').

    The activation carry lives in the persistent VMEM scratch `xbuf` (bf16 when
    the weights are bf16). Each layer streams one fused (S, 3S) weight block +
    bias, does one MXU matmul and the VPU/EUP combine; the last layer writes
    the output block and skips the dead carry store.
    """
    S = o_ref.shape[-1]
    layer = pl.program_id(1)
    last = pl.num_programs(1) - 1

    @pl.when(layer == 0)
    def _():
        xbuf[...] = x_ref[...].astype(xbuf.dtype)

    new_x = _highway_layer(xbuf[...], w_ref[0], b_ref[0], S)

    @pl.when(layer < last)
    def _():
        xbuf[...] = new_x.astype(xbuf.dtype)

    @pl.when(layer == last)
    def _():
        o_ref[...] = new_x.astype(o_ref.dtype)


# ---------------------------------------------------------------------------
# Parameter packing (do ONCE at init time, not per forward call)
# ---------------------------------------------------------------------------
def pack_highway_params(wg, bg, wn, bn, wl, bl, *, weight_dtype=jnp.bfloat16):
    """Fuse the three per-layer projections into one weight/bias stack.

    wg/wn/wl: (L, S, S), already laid out so the kernel computes x @ W
              (i.e. torch's weight transposed). bg/bn/bl: (L, 1, S).
    Returns w_cat (L, Sp, 3*Sp) in `weight_dtype` and b_cat (L, 1, 3*Sp) f32,
    where Sp = S rounded up to a multiple of 128 (padded rows/cols are zero,
    so padded activation columns stay exactly 0 through every layer).
    """
    L, S, _ = wg.shape
    Sp = ((S + 127) // 128) * 128
    if Sp != S:
        pw = ((0, 0), (0, Sp - S), (0, Sp - S))
        pb = ((0, 0), (0, 0), (0, Sp - S))
        wg, wn, wl = (jnp.pad(w, pw) for w in (wg, wn, wl))
        bg, bn, bl = (jnp.pad(b, pb) for b in (bg, bn, bl))
    w_cat = jnp.concatenate([wg, wn, wl], axis=-1).astype(weight_dtype)
    b_cat = jnp.concatenate([bg, bn, bl], axis=-1).astype(jnp.float32)
    return w_cat, b_cat


# ---------------------------------------------------------------------------
# Forward pass
# ---------------------------------------------------------------------------
def _pick_batch_tile(B, row_bytes, act_budget, num_tcs):
    """Largest batch tile (multiple of 8 dividing B, or B itself) that fits the
    activation budget and still gives every TensorCore a tile — so the weight
    stack is re-streamed at most num_tcs times."""
    cands = [d for d in range(8, B + 1, 8) if B % d == 0]
    if B not in cands:
        cands.append(B)
    fits = [d for d in cands if d * row_bytes <= act_budget] or [min(cands)]
    good = [d for d in fits if B // d >= num_tcs]
    return max(good) if good else max(fits)


def highway_forward_packed(x, w_cat, b_cat, *, force_grid=False):
    """Highway forward on pre-packed parameters.

    x: (B, S) with S <= w_cat.shape[1]; w_cat: (L, Sp, 3*Sp); b_cat: (L, 1, 3*Sp).
    """
    B, S = x.shape
    L, Sp, Sp3 = w_cat.shape
    assert Sp3 == 3 * Sp and S <= Sp
    if S != Sp:
        x = jnp.pad(x, ((0, 0), (0, Sp - S)))

    out_dtype = x.dtype
    wbytes = jnp.dtype(w_cat.dtype).itemsize
    vmem_cap = _vmem_capacity_bytes()
    num_tcs = _num_tensorcores()

    weight_bytes = L * Sp * 3 * Sp * wbytes + L * 3 * Sp * 4
    flops = int(L * (2 * B * Sp * 3 * Sp + 8 * B * Sp))
    transc = int(L * B * Sp)

    # ---------------- small problem: gridless, layer loop unrolled ----------
    # Only when the un-pipelined weight DMA (~weight_bytes / HBM-BW) is cheaper
    # than L grid steps (~0.35 us each), and B is small enough that the live
    # (B, 3S) f32 intermediate does not force vreg spills.
    resident_bytes = weight_bytes + 4 * B * Sp * 4 + B * 3 * Sp * 4
    use_nogrid = (not force_grid
                  and B <= 128
                  and weight_bytes <= L * 256 * 1024
                  and resident_bytes <= vmem_cap // 4)

    if use_nogrid:
        cost = pl.CostEstimate(
            flops=flops, transcendentals=transc,
            bytes_accessed=int(weight_bytes + 2 * B * Sp * x.dtype.itemsize))
        vmem_limit = int(min(vmem_cap - 16 * _MiB,
                             max(2 * resident_bytes, 32 * _MiB)))
        out = pl.pallas_call(
            highway_kernel_nogrid,
            out_shape=jax.ShapeDtypeStruct((B, Sp), out_dtype),
            compiler_params=pltpu.CompilerParams(vmem_limit_bytes=vmem_limit),
            cost_estimate=cost,
        )(x, w_cat, b_cat)
        return out[:, :S] if S != Sp else out

    # ---------------- general case: gridded, pipelined ----------------------
    carry_dtype = jnp.bfloat16 if w_cat.dtype == jnp.bfloat16 else jnp.float32
    w_block_bytes = Sp * 3 * Sp * wbytes + 3 * Sp * 4
    # 3-deep weight buffering only if it fits this generation's VMEM budget.
    nbuf = 3 if 3 * w_block_bytes <= vmem_cap // 3 else 2

    row_bytes = Sp * (2 * x.dtype.itemsize                 # x block (2-buf)
                      + 2 * jnp.dtype(out_dtype).itemsize  # out block (2-buf)
                      + jnp.dtype(carry_dtype).itemsize    # carry scratch
                      + 3 * 4 + 3 * 4)                     # (., 3S) f32 temps
    act_budget = max(vmem_cap // 2 - nbuf * w_block_bytes, 2 * _MiB)
    tb = _pick_batch_tile(B, row_bytes, act_budget, num_tcs)
    n_tiles = -(-B // tb)                                   # tb divides B or == B
    grid = (n_tiles, L)

    x_spec = pl.BlockSpec((tb, Sp), lambda bi, l: (bi, 0))
    if nbuf >= 3:
        w_spec = pl.BlockSpec((1, Sp, 3 * Sp), lambda bi, l: (l, 0, 0),
                              pipeline_mode=pl.Buffered(nbuf))
    else:
        w_spec = pl.BlockSpec((1, Sp, 3 * Sp), lambda bi, l: (l, 0, 0))
    b_spec = pl.BlockSpec((1, 1, 3 * Sp), lambda bi, l: (l, 0, 0))

    need = (nbuf * w_block_bytes
            + 2 * tb * Sp * (x.dtype.itemsize + jnp.dtype(out_dtype).itemsize)
            + tb * Sp * jnp.dtype(carry_dtype).itemsize
            + tb * 3 * Sp * 4)
    vmem_limit = int(min(vmem_cap - 16 * _MiB, max(2 * need, 32 * _MiB)))

    cost = pl.CostEstimate(
        flops=flops, transcendentals=transc,
        # weight stack is streamed once per batch tile
        bytes_accessed=int(n_tiles * weight_bytes + 2 * B * Sp * x.dtype.itemsize))

    out = pl.pallas_call(
        highway_kernel_grid,
        out_shape=jax.ShapeDtypeStruct((B, Sp), out_dtype),
        grid_spec=pltpu.PrefetchScalarGridSpec(
            num_scalar_prefetch=0,
            grid=grid,
            in_specs=[x_spec, w_spec, b_spec],
            out_specs=x_spec,
            scratch_shapes=[pltpu.VMEM((tb, Sp), carry_dtype)],
        ),
        compiler_params=pltpu.CompilerParams(
            dimension_semantics=("parallel", "arbitrary"),
            vmem_limit_bytes=vmem_limit),
        cost_estimate=cost,
    )(x, w_cat, b_cat)
    return out[:, :S] if S != Sp else out


def highway_forward(x, wg, bg, wn, bn, wl, bl, *,
                    weight_dtype=jnp.bfloat16, force_grid=False):
    """Convenience wrapper (packs on every call). For repeated inference, call
    pack_highway_params ONCE and use highway_forward_packed directly."""
    w_cat, b_cat = pack_highway_params(wg, bg, wn, bn, wl, bl,
                                       weight_dtype=weight_dtype)
    return highway_forward_packed(x, w_cat, b_cat, force_grid=force_grid)


# ---------------------------------------------------------------------------
# Pure-JAX reference mirroring the PyTorch forward (f = ReLU)
# ---------------------------------------------------------------------------
def highway_reference(x, wg, bg, wn, bn, wl, bl):
    x = x.astype(jnp.float32)
    for l in range(wg.shape[0]):
        gate = jax.nn.sigmoid(x @ wg[l] + bg[l])
        nonlinear = jnp.maximum(x @ wn[l] + bn[l], 0.0)
        linear = x @ wl[l] + bl[l]
        x = gate * nonlinear + (1.0 - gate) * linear
    return x


def _make_params(key, size, num_layers):
    """torch.nn.Linear-style init; weights returned pre-transposed for x @ W."""
    keys = jax.random.split(key, 6 * num_layers)
    bound = 1.0 / (size ** 0.5)

    def uni(k, shape):
        return jax.random.uniform(k, shape, jnp.float32, -bound, bound)

    wg = jnp.stack([uni(keys[6 * l + 0], (size, size)).T for l in range(num_layers)])
    bg = jnp.stack([uni(keys[6 * l + 1], (1, size)) for l in range(num_layers)])
    wn = jnp.stack([uni(keys[6 * l + 2], (size, size)).T for l in range(num_layers)])
    bn = jnp.stack([uni(keys[6 * l + 3], (1, size)) for l in range(num_layers)])
    wl = jnp.stack([uni(keys[6 * l + 4], (size, size)).T for l in range(num_layers)])
    bl = jnp.stack([uni(keys[6 * l + 5], (1, size)) for l in range(num_layers)])
    return wg, bg, wn, bn, wl, bl


if __name__ == "__main__":
    # Small shapes consistent with Highway(size, num_layers, f=relu).
    batch, size, num_layers = 8, 128, 3

    root = jax.random.PRNGKey(0)
    kx, kp, kx2, kp2 = jax.random.split(root, 4)
    x = jax.random.normal(kx, (batch, size), dtype=jnp.float32)
    params = _make_params(kp, size, num_layers)

    # Pack ONCE (hoisted out of the forward pass), for both precisions.
    packed_f32 = pack_highway_params(*params, weight_dtype=jnp.float32)
    packed_bf16 = pack_highway_params(*params, weight_dtype=jnp.bfloat16)

    # Tolerances: XLA's default TPU matmul precision (bf16 passes) need not
    # match Mosaic's f32 matmul lowering, so we don't assert bit-level
    # agreement; a semantic bug would produce O(1) errors, far above these.
    ref_f32 = highway_reference(x, *params)
    out_f32 = jax.block_until_ready(highway_forward_packed(x, *packed_f32))
    assert jnp.allclose(out_f32, ref_f32, atol=1e-2, rtol=1e-2), (
        f"f32 gridless: max abs err {jnp.max(jnp.abs(out_f32 - ref_f32))}")

    # bf16-weight reference: bf16-rounded weights, f32 activations. The kernel
    # additionally carries bf16 activations between layers (by design), so the
    # tolerance is relaxed; drift grows slowly with num_layers.
    def r16(w):
        return w.astype(jnp.bfloat16).astype(jnp.float32)
    wg, bg, wn, bn, wl, bl = params
    ref_bf16 = highway_reference(x, r16(wg), bg, r16(wn), bn, r16(wl), bl)

    out_fast = jax.block_until_ready(highway_forward_packed(x, *packed_bf16))
    assert jnp.allclose(out_fast, ref_bf16, atol=3e-2, rtol=3e-2), (
        f"bf16 gridless: max abs err {jnp.max(jnp.abs(out_fast - ref_bf16))}")

    out_grid = jax.block_until_ready(
        highway_forward_packed(x, *packed_bf16, force_grid=True))
    assert jnp.allclose(out_grid, ref_bf16, atol=3e-2, rtol=3e-2), (
        f"bf16 grid: max abs err {jnp.max(jnp.abs(out_grid - ref_bf16))}")

    # Non-128-multiple feature size exercises the lane-padding path.
    size2, layers2 = 96, 2
    x2 = jax.random.normal(kx2, (batch, size2), dtype=jnp.float32)
    params2 = _make_params(kp2, size2, layers2)
    packed2 = pack_highway_params(*params2, weight_dtype=jnp.float32)
    ref2 = highway_reference(x2, *params2)
    out2 = jax.block_until_ready(highway_forward_packed(x2, *packed2))
    assert out2.shape == (batch, size2)
    assert jnp.allclose(out2, ref2, atol=1e-2, rtol=1e-2), (
        f"padded-S: max abs err {jnp.max(jnp.abs(out2 - ref2))}")

    print("KERNEL_OK")
</pallas_src>

<mosaic_0001>
module attributes {stable_mosaic.version = 11 : i64} {
  func.func @highway_kernel_nogrid(%arg0: memref<8x128xf32, #tpu.memory_space<vmem>>, %arg1: memref<3x128x384xf32, #tpu.memory_space<vmem>>, %arg2: memref<3x1x384xf32, #tpu.memory_space<vmem>>, %arg3: memref<8x128xf32, #tpu.memory_space<vmem>>) attributes {dimension_semantics = [], scalar_prefetch = 0 : i64, scratch_operands = 0 : i64, tpu.core_type = #tpu.core_type<tc>} {
    %c0 = arith.constant 0 : index
    %c0_0 = arith.constant 0 : index
    %0 = vector.load %arg0[%c0, %c0_0] : memref<8x128xf32, #tpu.memory_space<vmem>>, vector<8x128xf32>
    %c0_1 = arith.constant 0 : index
    %c0_2 = arith.constant 0 : index
    %c0_3 = arith.constant 0 : index
    %1 = vector.load %arg1[%c0_1, %c0_2, %c0_3] : memref<3x128x384xf32, #tpu.memory_space<vmem>>, vector<1x128x384xf32>
    %2 = vector.shape_cast %1 : vector<1x128x384xf32> to vector<128x384xf32>
    %c0_4 = arith.constant 0 : index
    %c0_5 = arith.constant 0 : index
    %c0_6 = arith.constant 0 : index
    %3 = vector.load %arg2[%c0_4, %c0_5, %c0_6] : memref<3x1x384xf32, #tpu.memory_space<vmem>>, vector<1x1x384xf32>
    %4 = vector.shape_cast %3 : vector<1x1x384xf32> to vector<1x384xf32>
    %cst = arith.constant dense<0.000000e+00> : vector<8x384xf32>
    %5 = tpu.matmul %0, %2, %cst {dimension_numbers = #tpu.dot_dimension_numbers<[1], [0], [0], [1], [0, 0, 1, 1], [], []>} : vector<8x128xf32>, vector<128x384xf32>, vector<8x384xf32> -> vector<8x384xf32>
    %6 = vector.broadcast %4 : vector<1x384xf32> to vector<8x384xf32>
    %7 = arith.addf %5, %6 : vector<8x384xf32>
    %8 = vector.extract_strided_slice %7 {offsets = [0, 0], sizes = [8, 128], strides = [1, 1]} : vector<8x384xf32> to vector<8x128xf32>
    %9 = arith.negf %8 : vector<8x128xf32>
    %10 = math.exp %9 : vector<8x128xf32>
    %cst_7 = arith.constant 1.000000e+00 : f32
    %11 = vector.broadcast %cst_7 : f32 to vector<8x128xf32>
    %12 = arith.addf %11, %10 : vector<8x128xf32>
    %13 = arith.divf %11, %12 : vector<8x128xf32>
    %14 = vector.extract_strided_slice %7 {offsets = [0, 128], sizes = [8, 128], strides = [1, 1]} : vector<8x384xf32> to vector<8x128xf32>
    %cst_8 = arith.constant 0.000000e+00 : f32
    %15 = vector.broadcast %cst_8 : f32 to vector<8x128xf32>
    %16 = arith.maximumf %14, %15 : vector<8x128xf32>
    %17 = vector.extract_strided_slice %7 {offsets = [0, 256], sizes = [8, 128], strides = [1, 1]} : vector<8x384xf32> to vector<8x128xf32>
    %18 = arith.subf %16, %17 : vector<8x128xf32>
    %19 = arith.mulf %13, %18 : vector<8x128xf32>
    %20 = arith.addf %17, %19 : vector<8x128xf32>
    %c1 = arith.constant 1 : index
    %c0_9 = arith.constant 0 : index
    %c0_10 = arith.constant 0 : index
    %21 = vector.load %arg1[%c1, %c0_9, %c0_10] : memref<3x128x384xf32, #tpu.memory_space<vmem>>, vector<1x128x384xf32>
    %22 = vector.shape_cast %21 : vector<1x128x384xf32> to vector<128x384xf32>
    %c1_11 = arith.constant 1 : index
    %c0_12 = arith.constant 0 : index
    %c0_13 = arith.constant 0 : index
    %23 = vector.load %arg2[%c1_11, %c0_12, %c0_13] : memref<3x1x384xf32, #tpu.memory_space<vmem>>, vector<1x1x384xf32>
    %24 = vector.shape_cast %23 : vector<1x1x384xf32> to vector<1x384xf32>
    %cst_14 = arith.constant dense<0.000000e+00> : vector<8x384xf32>
    %25 = tpu.matmul %20, %22, %cst_14 {dimension_numbers = #tpu.dot_dimension_numbers<[1], [0], [0], [1], [0, 0, 1, 1], [], []>} : vector<8x128xf32>, vector<128x384xf32>, vector<8x384xf32> -> vector<8x384xf32>
    %26 = vector.broadcast %24 : vector<1x384xf32> to vector<8x384xf32>
    %27 = arith.addf %25, %26 : vector<8x384xf32>
    %28 = vector.extract_strided_slice %27 {offsets = [0, 0], sizes = [8, 128], strides = [1, 1]} : vector<8x384xf32> to vector<8x128xf32>
    %29 = arith.negf %28 : vector<8x128xf32>
    %30 = math.exp %29 : vector<8x128xf32>
    %cst_15 = arith.constant 1.000000e+00 : f32
    %31 = vector.broadcast %cst_15 : f32 to vector<8x128xf32>
    %32 = arith.addf %31, %30 : vector<8x128xf32>
    %33 = arith.divf %31, %32 : vector<8x128xf32>
    %34 = vector.extract_strided_slice %27 {offsets = [0, 128], sizes = [8, 128], strides = [1, 1]} : vector<8x384xf32> to vector<8x128xf32>
    %cst_16 = arith.constant 0.000000e+00 : f32
    %35 = vector.broadcast %cst_16 : f32 to vector<8x128xf32>
    %36 = arith.maximumf %34, %35 : vector<8x128xf32>
    %37 = vector.extract_strided_slice %27 {offsets = [0, 256], sizes = [8, 128], strides = [1, 1]} : vector<8x384xf32> to vector<8x128xf32>
    %38 = arith.subf %36, %37 : vector<8x128xf32>
    %39 = arith.mulf %33, %38 : vector<8x128xf32>
    %40 = arith.addf %37, %39 : vector<8x128xf32>
    %c2 = arith.constant 2 : index
    %c0_17 = arith.constant 0 : index
    %c0_18 = arith.constant 0 : index
    %41 = vector.load %arg1[%c2, %c0_17, %c0_18] : memref<3x128x384xf32, #tpu.memory_space<vmem>>, vector<1x128x384xf32>
    %42 = vector.shape_cast %41 : vector<1x128x384xf32> to vector<128x384xf32>
    %c2_19 = arith.constant 2 : index
    %c0_20 = arith.constant 0 : index
    %c0_21 = arith.constant 0 : index
    %43 = vector.load %arg2[%c2_19, %c0_20, %c0_21] : memref<3x1x384xf32, #tpu.memory_space<vmem>>, vector<1x1x384xf32>
    %44 = vector.shape_cast %43 : vector<1x1x384xf32> to vector<1x384xf32>
    %cst_22 = arith.constant dense<0.000000e+00> : vector<8x384xf32>
    %45 = tpu.matmul %40, %42, %cst_22 {dimension_numbers = #tpu.dot_dimension_numbers<[1], [0], [0], [1], [0, 0, 1, 1], [], []>} : vector<8x128xf32>, vector<128x384xf32>, vector<8x384xf32> -> vector<8x384xf32>
    %46 = vector.broadcast %44 : vector<1x384xf32> to vector<8x384xf32>
    %47 = arith.addf %45, %46 : vector<8x384xf32>
    %48 = vector.extract_strided_slice %47 {offsets = [0, 0], sizes = [8, 128], strides = [1, 1]} : vector<8x384xf32> to vector<8x128xf32>
    %49 = arith.negf %48 : vector<8x128xf32>
    %50 = math.exp %49 : vector<8x128xf32>
    %cst_23 = arith.constant 1.000000e+00 : f32
    %51 = vector.broadcast %cst_23 : f32 to vector<8x128xf32>
    %52 = arith.addf %51, %50 : vector<8x128xf32>
    %53 = arith.divf %51, %52 : vector<8x128xf32>
    %54 = vector.extract_strided_slice %47 {offsets = [0, 128], sizes = [8, 128], strides = [1, 1]} : vector<8x384xf32> to vector<8x128xf32>
    %cst_24 = arith.constant 0.000000e+00 : f32
    %55 = vector.broadcast %cst_24 : f32 to vector<8x128xf32>
    %56 = arith.maximumf %54, %55 : vector<8x128xf32>
    %57 = vector.extract_strided_slice %47 {offsets = [0, 256], sizes = [8, 128], strides = [1, 1]} : vector<8x384xf32> to vector<8x128xf32>
    %58 = arith.subf %56, %57 : vector<8x128xf32>
    %59 = arith.mulf %53, %58 : vector<8x128xf32>
    %60 = arith.addf %57, %59 : vector<8x128xf32>
    %c0_25 = arith.constant 0 : index
    %c0_26 = arith.constant 0 : index
    %61 = vector.load %arg3[%c0_25, %c0_26] : memref<8x128xf32, #tpu.memory_space<vmem>>, vector<8x128xf32>
    tpu.vector_store %arg3[%c0_25, %c0_26], %60 {strides = array<i32>} : memref<8x128xf32, #tpu.memory_space<vmem>>, vector<8x128xf32>,
    return
  }
}

</mosaic_0001>

<bundles_post_ra>
// kernel: tpu_custom_call.1
= control target key start
LH: loop header
LB: loop body
LE: loop exit
PB: predicated region body
PF: predicated region fallthrough
CT: control target
= control target key end

     0   :  { %8 = vsyncpa [#allocation3], 0  ;;  %s666_s0 = inlined_call_operand.hbm [shape: f32[8,128], index: 0, kind: input, shape index: {}]   ;;  %s667_s1 = inlined_call_operand.hbm [shape: f32[3,128,384], index: 1, kind: input, shape index: {}]   ;;  %s668_s2 = inlined_call_operand.hbm [shape: f32[3,1,384], index: 2, kind: input, shape index: {}]   ;;  %s669_s3 = inlined_call_operand.hbm [shape: f32[8,128], index: 3, kind: output, shape index: {}]  }
   0x1   :  { %9 = vsyncpa [#allocation6], 0  ;;  %s26_s14 = sshll.u32 %s667_s1, 4  ;;  %s27_s14 = int_to_ptr.hbm [resolvable:$true] %s26_s14 }
   0x2   :  { %10 = vsyncpa [#allocation4], 0  ;;  %s626_s15 = smov [#allocation5]   ;;  %s16_s19 = sshll.u32 %s666_s0, 4  ;;  %s17_s19 = int_to_ptr.hbm [resolvable:$true] %s16_s19 }
   0x3   :  { %s28_s16 = sshll.u32 %s626_s15, 4  ;;  %s627_s20 = smov 384   ;;  %s29_s16 = int_to_ptr.vmem [resolvable:$true] %s28_s16 }
   0x4   :  { %s628_s21 = smov 24   ;;  %s629_s22 = smov [#allocation2]  }
   0x5   :  { %34 = dma.hbm_to_vmem [thread:$0]  %s27_s14, 18432, %s29_s16, [#allocation6], %s627_s20, %s627_s20, %s628_s21  }
   0x6   :  { %s18_s23 = sshll.u32 %s629_s22, 4  ;;  %s39_s26 = sshll.u32 %s668_s2, 4  ;;  %s19_s23 = int_to_ptr.vmem [resolvable:$true] %s18_s23  ;;  %s40_s26 = int_to_ptr.hbm [resolvable:$true] %s39_s26 }
   0x7   :  { %21 = dma.hbm_to_vmem [thread:$0]  %s17_s19, 128, %s19_s23, [#allocation3]  }
   0x8   :  { %s630_s1 = smov [#allocation7]   ;;  %s631_s28 = smov 48  }
   0x9   :  { %s41_s27 = sshll.u32 %s630_s1, 4  ;;  %s632_s29 = smov 3   ;;  %s42_s27 = int_to_ptr.vmem [resolvable:$true] %s41_s27 }
   0xa   :  { %47 = dma.hbm_to_vmem [thread:$0]  %s40_s26, 144, %s42_s27, [#allocation6], %s631_s28, %s631_s28, %s632_s29  }
   0xb   :  { %620 = dma.done.wait [#allocation3], 128  }
   0xc   :  { %621 = vsyncadd [#allocation3], 4294967168 }
   0xd   :  { %622 = dma.done.wait [#allocation6], 18576  }
   0xe   :  { %623 = vsyncadd [#allocation6], 4294948720  ;;  %v106_v0 = vld [vmem:[#allocation5 + $0x168] sm:$0xff]  ;;  %v103_v1 = vld [vmem:[#allocation5 + $0x150] sm:$0xff]  ;;  %s633_s0 = smov [#allocation8]   ;;  %s490_s5 = sshll.u32 %s669_s3, 4  ;;  %s491_s5 = int_to_ptr.hbm [resolvable:$true] %s490_s5 }
   0xf   :  { %117 = vmatpush.msra.mxu0 %v106_v0  ;;  %v100_v2 = vld [vmem:[#allocation5 + $0x138] sm:$0xff]  ;;  %v97_v4 = vld [vmem:[#allocation5 + $0x120] sm:$0xff]  ;;  %v107_v6 = vld [vmem:[#allocation5 + $0x170] sm:$0xff]  ;;  %s488_s2 = sshll.u32 %s633_s0, 4  ;;  %s489_s2 = int_to_ptr.vmem [resolvable:$true] %s488_s2 }
  0x10   :  { %v108_v3 = vld [vmem:[#allocation5 + $0x178] sm:$0xff]  ;;  %v105_v5 = vld [vmem:[#allocation5 + $0x160] sm:$0xff]  ;;  %v102_v7 = vld [vmem:[#allocation5 + $0x148] sm:$0xff]  ;;  %137 = vmatpush.msra.mxu1 %v107_v6 }
  0x11   :  { %118 = vmatpush.msra.mxu0 %v103_v1  ;;  %157 = vmatpush.msra.mxu2 %v108_v3  ;;  %v94_v8 = vld [vmem:[#allocation5 + $0x108] sm:$0xff]  ;;  %v104_v9 = vld [vmem:[#allocation5 + $0x158] sm:$0xff]  ;;  %v99_v10 = vld [vmem:[#allocation5 + $0x130] sm:$0xff] }
  0x12   :  { %v101_v11 = vld [vmem:[#allocation5 + $0x140] sm:$0xff]  ;;  %v91_v12 = vld [vmem:[#allocation5 + $0xf0] sm:$0xff]  ;;  %138 = vmatpush.msra.mxu1 %v104_v9  ;;  %v96_v13 = vld [vmem:[#allocation5 + $0x118] sm:$0xff] }
  0x13   :  { %119 = vmatpush.msra.mxu0 %v100_v2  ;;  %158 = vmatpush.msra.mxu2 %v105_v5  ;;  %v98_v14 = vld [vmem:[#allocation5 + $0x128] sm:$0xff]  ;;  %v88_v15 = vld [vmem:[#allocation5 + $0xd8] sm:$0xff]  ;;  %v93_v16 = vld [vmem:[#allocation5 + $0x100] sm:$0xff] }
  0x14   :  { %139 = vmatpush.msra.mxu1 %v101_v11  ;;  %v95_v17 = vld [vmem:[#allocation5 + $0x110] sm:$0xff]  ;;  %v85_v18 = vld [vmem:[#allocation5 + $0xc0] sm:$0xff]  ;;  %v90_v19 = vld [vmem:[#allocation5 + $0xe8] sm:$0xff] }
  0x15   :  { %120 = vmatpush.msra.mxu0 %v97_v4  ;;  %159 = vmatpush.msra.mxu2 %v102_v7  ;;  %v92_v20 = vld [vmem:[#allocation5 + $0xf8] sm:$0xff]  ;;  %v82_v21 = vld [vmem:[#allocation5 + $0xa8] sm:$0xff]  ;;  %v87_v22 = vld [vmem:[#allocation5 + $0xd0] sm:$0xff] }
  0x16   :  { %140 = vmatpush.msra.mxu1 %v98_v14  ;;  %v89_v23 = vld [vmem:[#allocation5 + $0xe0] sm:$0xff]  ;;  %v79_v24 = vld [vmem:[#allocation5 + $0x90] sm:$0xff]  ;;  %v84_v25 = vld [vmem:[#allocation5 + $0xb8] sm:$0xff] }
  0x17   :  { %121 = vmatpush.msra.mxu0 %v94_v8  ;;  %160 = vmatpush.msra.mxu2 %v99_v10  ;;  %v86_v26 = vld [vmem:[#allocation5 + $0xc8] sm:$0xff]  ;;  %v76_v27 = vld [vmem:[#allocation5 + $0x78] sm:$0xff]  ;;  %v81_v28 = vld [vmem:[#allocation5 + $0xa0] sm:$0xff] }
  0x18   :  { %141 = vmatpush.msra.mxu1 %v95_v17  ;;  %v83_v29 = vld [vmem:[#allocation5 + $0xb0] sm:$0xff]  ;;  %v73_v30 = vld [vmem:[#allocation5 + $0x60] sm:$0xff]  ;;  %v78_v31 = vld [vmem:[#allocation5 + $0x88] sm:$0xff] }
  0x19   :  { %122 = vmatpush.msra.mxu0 %v91_v12  ;;  %161 = vmatpush.msra.mxu2 %v96_v13  ;;  %v80_v32 = vld [vmem:[#allocation5 + $0x98] sm:$0xff]  ;;  %v70_v33 = vld [vmem:[#allocation5 + $0x48] sm:$0xff]  ;;  %v75_v34 = vld [vmem:[#allocation5 + $0x70] sm:$0xff] }
  0x1a   :  { %142 = vmatpush.msra.mxu1 %v92_v20  ;;  %v77_v35 = vld [vmem:[#allocation5 + $0x80] sm:$0xff]  ;;  %v67_v36 = vld [vmem:[#allocation5 + $0x30] sm:$0xff]  ;;  %v72_v37 = vld [vmem:[#allocation5 + $0x58] sm:$0xff] }
  0x1b   :  { %123 = vmatpush.msra.mxu0 %v88_v15  ;;  %162 = vmatpush.msra.mxu2 %v93_v16  ;;  %v74_v38 = vld [vmem:[#allocation5 + $0x68] sm:$0xff]  ;;  %v64_v39 = vld [vmem:[#allocation5 + $0x18] sm:$0xff]  ;;  %v69_v40 = vld [vmem:[#allocation5 + $0x40] sm:$0xff] }
  0x1c   :  { %143 = vmatpush.msra.mxu1 %v89_v23  ;;  %v71_v41 = vld [vmem:[#allocation5 + $0x50] sm:$0xff]  ;;  %v61_v42 = vld [vmem:[#allocation5] sm:$0xff]  ;;  %v60_v43 = vld [vmem:[#allocation2] sm:$0xff] }
  0x1d   :  { %124 = vmatpush.msra.mxu0 %v85_v18  ;;  %163 = vmatpush.msra.mxu2 %v90_v19  ;;  %v66_v44 = vld [vmem:[#allocation5 + $0x28] sm:$0xff]  ;;  %v68_v45 = vld [vmem:[#allocation5 + $0x38] sm:$0xff]  ;;  %v63_v46 = vld [vmem:[#allocation5 + $0x10] sm:$0xff] }
  0x1e   :  { %144 = vmatpush.msra.mxu1 %v86_v26  ;;  %v65_v47 = vld [vmem:[#allocation5 + $0x20] sm:$0xff]  ;;  %v62_v48 = vld [vmem:[#allocation5 + $0x8] sm:$0xff]  ;;  %v247_v50 = vld [vmem:[#allocation5 + $0x2f0] sm:$0xff] }
  0x1f   :  { %125 = vmatpush.msra.mxu0 %v82_v21  ;;  %164 = vmatpush.msra.mxu2 %v87_v22  ;;  %v246_v49 = vld [vmem:[#allocation5 + $0x2e8] sm:$0xff]  ;;  %v248_v51 = vld [vmem:[#allocation5 + $0x2f8] sm:$0xff]  ;;  %v243_v52 = vld [vmem:[#allocation5 + $0x2d0] sm:$0xff] }
  0x20   :  { %145 = vmatpush.msra.mxu1 %v83_v29  ;;  %258 = vmatpush.msra.mxu3 %v246_v49  ;;  %v244_v53 = vld [vmem:[#allocation5 + $0x2d8] sm:$0xff]  ;;  %v245_v54 = vld [vmem:[#allocation5 + $0x2e0] sm:$0xff]  ;;  %v242_v57 = vld [vmem:[#allocation5 + $0x2c8] sm:$0xff] }
  0x21   :  { %126 = vmatpush.msra.mxu0 %v79_v24  ;;  %165 = vmatpush.msra.mxu2 %v84_v25  ;;  %v240_v55 = vld [vmem:[#allocation5 + $0x2b8] sm:$0xff]  ;;  %v241_v56 = vld [vmem:[#allocation5 + $0x2c0] sm:$0xff]  ;;  %v238_v59 = vld [vmem:[#allocation5 + $0x2a8] sm:$0xff] }
  0x22   :  { %146 = vmatpush.msra.mxu1 %v80_v32  ;;  %259 = vmatpush.msra.mxu3 %v243_v52  ;;  %v237_v58 = vld [vmem:[#allocation5 + $0x2a0] sm:$0xff]  ;;  %v239_v60 = vld [vmem:[#allocation5 + $0x2b0] sm:$0xff]  ;;  %v234_v61 = vld [vmem:[#allocation5 + $0x288] sm:$0xff] }
  0x23   :  { %127 = vmatpush.msra.mxu0 %v76_v27  ;;  %166 = vmatpush.msra.mxu2 %v81_v28  ;;  %v235_v62 = vld [vmem:[#allocation5 + $0x290] sm:$0xff]  ;;  %v236_v63 = vld [vmem:[#allocation5 + $0x298] sm:$0xff]  ;;  %v233_v2 = vld [vmem:[#allocation5 + $0x280] sm:$0xff] }
  0x24   :  { %147 = vmatpush.msra.mxu1 %v77_v35  ;;  %260 = vmatpush.msra.mxu3 %v240_v55  ;;  %v231_v0 = vld [vmem:[#allocation5 + $0x270] sm:$0xff]  ;;  %v232_v1 = vld [vmem:[#allocation5 + $0x278] sm:$0xff]  ;;  %v229_v4 = vld [vmem:[#allocation5 + $0x260] sm:$0xff] }
  0x25   :  { %128 = vmatpush.msra.mxu0 %v73_v30  ;;  %167 = vmatpush.msra.mxu2 %v78_v31  ;;  %v228_v3 = vld [vmem:[#allocation5 + $0x258] sm:$0xff]  ;;  %v230_v5 = vld [vmem:[#allocation5 + $0x268] sm:$0xff]  ;;  %v225_v6 = vld [vmem:[#allocation5 + $0x240] sm:$0xff] }
  0x26   :  { %148 = vmatpush.msra.mxu1 %v74_v38  ;;  %261 = vmatpush.msra.mxu3 %v237_v58  ;;  %v226_v7 = vld [vmem:[#allocation5 + $0x248] sm:$0xff]  ;;  %v227_v8 = vld [vmem:[#allocation5 + $0x250] sm:$0xff]  ;;  %v224_v11 = vld [vmem:[#allocation5 + $0x238] sm:$0xff] }
  0x27   :  { %129 = vmatpush.msra.mxu0 %v70_v33  ;;  %168 = vmatpush.msra.mxu2 %v75_v34  ;;  %v222_v9 = vld [vmem:[#allocation5 + $0x228] sm:$0xff]  ;;  %v223_v10 = vld [vmem:[#allocation5 + $0x230] sm:$0xff]  ;;  %v220_v13 = vld [vmem:[#allocation5 + $0x218] sm:$0xff] }
  0x28   :  { %149 = vmatpush.msra.mxu1 %v71_v41  ;;  %262 = vmatpush.msra.mxu3 %v234_v61  ;;  %v219_v12 = vld [vmem:[#allocation5 + $0x210] sm:$0xff]  ;;  %v221_v14 = vld [vmem:[#allocation5 + $0x220] sm:$0xff]  ;;  %v216_v15 = vld [vmem:[#allocation5 + $0x1f8] sm:$0xff] }
  0x29   :  { %130 = vmatpush.msra.mxu0 %v67_v36  ;;  %169 = vmatpush.msra.mxu2 %v72_v37  ;;  %v217_v16 = vld [vmem:[#allocation5 + $0x200] sm:$0xff]  ;;  %v218_v17 = vld [vmem:[#allocation5 + $0x208] sm:$0xff]  ;;  %v215_v20 = vld [vmem:[#allocation5 + $0x1f0] sm:$0xff] }
  0x2a   :  { %150 = vmatpush.msra.mxu1 %v68_v45  ;;  %263 = vmatpush.msra.mxu3 %v231_v0  ;;  %v213_v18 = vld [vmem:[#allocation5 + $0x1e0] sm:$0xff]  ;;  %v214_v19 = vld [vmem:[#allocation5 + $0x1e8] sm:$0xff]  ;;  %v211_v23 = vld [vmem:[#allocation5 + $0x1d0] sm:$0xff] }
  0x2b   :  { %131 = vmatpush.msra.mxu0 %v64_v39  ;;  %170 = vmatpush.msra.mxu2 %v69_v40  ;;  %v109_v21 = vld [vmem:[#allocation7] sm:$0x7]  ;;  %v210_v22 = vld [vmem:[#allocation5 + $0x1c8] sm:$0xff]  ;;  %v212_v24 = vld [vmem:[#allocation5 + $0x1d8] sm:$0xff] }
  0x2c   :  { %151 = vmatpush.msra.mxu1 %v65_v47  ;;  %264 = vmatpush.msra.mxu3 %v228_v3  ;;  %v111_v25 = vperm.slane %v109_v21, 0  ;;  %v207_v26 = vld [vmem:[#allocation5 + $0x1b0] sm:$0xff]  ;;  %v208_v27 = vld [vmem:[#allocation5 + $0x1b8] sm:$0xff]  ;;  %v209_v28 = vld [vmem:[#allocation5 + $0x1c0] sm:$0xff]  ;;  %v112_v40 = vperm.slane %v109_v21, 1 }
  0x2d   :  { %132 = vmatpush.msra.mxu0 %v61_v42  ;;  %171 = vmatpush.msra.mxu2 %v66_v44  ;;  %v204_v29 = vld [vmem:[#allocation5 + $0x198] sm:$0xff]  ;;  %v205_v30 = vld [vmem:[#allocation5 + $0x1a0] sm:$0xff]  ;;  %v206_v31 = vld [vmem:[#allocation5 + $0x1a8] sm:$0xff] }
  0x2e   :  { %133 = vmatmul.f32.vlgmr.msra.gmra.mxu0 %v60_v43  ;;  %152 = vmatpush.msra.mxu1 %v62_v48  ;;  %v201_v34 = vld [vmem:[#allocation5 + $0x180] sm:$0xff]  ;;  %v202_v35 = vld [vmem:[#allocation5 + $0x188] sm:$0xff]  ;;  %v203_v36 = vld [vmem:[#allocation5 + $0x190] sm:$0xff] }
  0x2f   :  { %172 = vmatpush.msra.mxu2 %v63_v46  ;;  %153 = vmatmul.f32.vlgmr.msra.gmra.mxu1 %v60_v43  ;;  %v388_v61 = vld [vmem:[#allocation5 + $0x470] sm:$0xff]  ;;  %v385_v0 = vld [vmem:[#allocation5 + $0x458] sm:$0xff]  ;;  %v382_v3 = vld [vmem:[#allocation5 + $0x440] sm:$0xff] }
  0x30   :  { %173 = vmatmul.f32.vlgmr.msra.gmra.mxu2 %v60_v43  ;;  %278 = vmatpush.msrb.mxu0 %v247_v50  ;;  %v113_v43 = vperm.slane %v109_v21, 2  ;;  %v364_v21 = vld [vmem:[#allocation5 + $0x3b0] sm:$0xff] }
  0x31   :  { %298 = vmatpush.msrb.mxu1 %v248_v51  ;;  %265 = vmatpush.msra.mxu3 %v225_v6  ;;  %v379_v6 = vld [vmem:[#allocation5 + $0x428] sm:$0xff] }
  0x32   :  { %279 = vmatpush.msrb.mxu0 %v244_v53 }
  0x33   :  { %299 = vmatpush.msrb.mxu1 %v245_v54  ;;  %266 = vmatpush.msra.mxu3 %v222_v9  ;;  %v376_v9 = vld [vmem:[#allocation5 + $0x410] sm:$0xff] }
  0x34   :  { %280 = vmatpush.msrb.mxu0 %v241_v56 }
  0x35   :  { %300 = vmatpush.msrb.mxu1 %v242_v57  ;;  %267 = vmatpush.msra.mxu3 %v219_v12  ;;  %v373_v12 = vld [vmem:[#allocation5 + $0x3f8] sm:$0xff] }
  0x36   :  { %281 = vmatpush.msrb.mxu0 %v238_v59 }
  0x37   :  { %301 = vmatpush.msrb.mxu1 %v239_v60  ;;  %268 = vmatpush.msra.mxu3 %v216_v15  ;;  %v387_v60 = vld [vmem:[#allocation5 + $0x468] sm:$0xff]  ;;  %v370_v15 = vld [vmem:[#allocation5 + $0x3e0] sm:$0xff] }
  0x38   :  { %282 = vmatpush.msrb.mxu0 %v235_v62  ;;  %v389_v62 = vld [vmem:[#allocation5 + $0x478] sm:$0xff]  ;;  %399 = vmatpush.msrb.mxu2 %v387_v60 }
  0x39   :  { %302 = vmatpush.msrb.mxu1 %v236_v63  ;;  %269 = vmatpush.msra.mxu3 %v213_v18  ;;  %v384_v63 = vld [vmem:[#allocation5 + $0x450] sm:$0xff]  ;;  %v367_v18 = vld [vmem:[#allocation5 + $0x3c8] sm:$0xff] }
  0x3a   :  { %283 = vmatpush.msrb.mxu0 %v232_v1  ;;  %v386_v1 = vld [vmem:[#allocation5 + $0x460] sm:$0xff]  ;;  %400 = vmatpush.msrb.mxu2 %v384_v63 }
  0x3b   :  { %303 = vmatpush.msrb.mxu1 %v233_v2  ;;  %270 = vmatpush.msra.mxu3 %v210_v22  ;;  %v381_v2 = vld [vmem:[#allocation5 + $0x438] sm:$0xff] }
  0x3c   :  { %284 = vmatpush.msrb.mxu0 %v229_v4  ;;  %v383_v4 = vld [vmem:[#allocation5 + $0x448] sm:$0xff]  ;;  %401 = vmatpush.msrb.mxu2 %v381_v2  ;;  %v365_v22 = vld [vmem:[#allocation5 + $0x3b8] sm:$0xff] }
  0x3d   :  { %304 = vmatpush.msrb.mxu1 %v230_v5  ;;  %271 = vmatpush.msra.mxu3 %v207_v26  ;;  %v378_v5 = vld [vmem:[#allocation5 + $0x420] sm:$0xff]  ;;  %v357_v26 = vld [vmem:[#allocation5 + $0x378] sm:$0xff] }
  0x3e   :  { %285 = vmatpush.msrb.mxu0 %v226_v7  ;;  %v380_v7 = vld [vmem:[#allocation5 + $0x430] sm:$0xff]  ;;  %402 = vmatpush.msrb.mxu2 %v378_v5 }
  0x3f   :  { %305 = vmatpush.msrb.mxu1 %v227_v8  ;;  %272 = vmatpush.msra.mxu3 %v204_v29  ;;  %v375_v8 = vld [vmem:[#allocation5 + $0x408] sm:$0xff]  ;;  %v354_v29 = vld [vmem:[#allocation5 + $0x360] sm:$0xff] }
  0x40   :  { %286 = vmatpush.msrb.mxu0 %v223_v10  ;;  %v377_v10 = vld [vmem:[#allocation5 + $0x418] sm:$0xff]  ;;  %403 = vmatpush.msrb.mxu2 %v375_v8 }
  0x41   :  { %306 = vmatpush.msrb.mxu1 %v224_v11  ;;  %273 = vmatpush.msra.mxu3 %v201_v34  ;;  %v372_v11 = vld [vmem:[#allocation5 + $0x3f0] sm:$0xff]  ;;  %v353_v34 = vld [vmem:[#allocation5 + $0x358] sm:$0xff] }
  0x42   :  { %287 = vmatpush.msrb.mxu0 %v220_v13  ;;  %v374_v13 = vld [vmem:[#allocation5 + $0x400] sm:$0xff]  ;;  %404 = vmatpush.msrb.mxu2 %v372_v11 }
  0x43   :  { %307 = vmatpush.msrb.mxu1 %v221_v14  ;;  %419 = vmatpush.msrb.mxu3 %v388_v61  ;;  %v369_v14 = vld [vmem:[#allocation5 + $0x3d8] sm:$0xff] }
  0x44   :  { %288 = vmatpush.msrb.mxu0 %v217_v16  ;;  %v371_v16 = vld [vmem:[#allocation5 + $0x3e8] sm:$0xff]  ;;  %405 = vmatpush.msrb.mxu2 %v369_v14 }
  0x45   :  { %308 = vmatpush.msrb.mxu1 %v218_v17  ;;  %420 = vmatpush.msrb.mxu3 %v385_v0  ;;  %v366_v17 = vld [vmem:[#allocation5 + $0x3c0] sm:$0xff] }
  0x46   :  { %289 = vmatpush.msrb.mxu0 %v214_v19  ;;  %v368_v19 = vld [vmem:[#allocation5 + $0x3d0] sm:$0xff]  ;;  %406 = vmatpush.msrb.mxu2 %v366_v17 }
  0x47   :  { %309 = vmatpush.msrb.mxu1 %v215_v20  ;;  %421 = vmatpush.msrb.mxu3 %v382_v3  ;;  %v363_v20 = vld [vmem:[#allocation5 + $0x3a8] sm:$0xff] }
  0x48   :  { %290 = vmatpush.msrb.mxu0 %v211_v23  ;;  %407 = vmatpush.msrb.mxu2 %v363_v20  ;;  %v360_v23 = vld [vmem:[#allocation5 + $0x390] sm:$0xff] }
  0x49   :  { %310 = vmatpush.msrb.mxu1 %v212_v24  ;;  %422 = vmatpush.msrb.mxu3 %v379_v6  ;;  %v361_v24 = vld [vmem:[#allocation5 + $0x398] sm:$0xff] }
  0x4a   :  { %291 = vmatpush.msrb.mxu0 %v208_v27  ;;  %408 = vmatpush.msrb.mxu2 %v360_v23  ;;  %v358_v27 = vld [vmem:[#allocation5 + $0x380] sm:$0xff] }
  0x4b   :  { %311 = vmatpush.msrb.mxu1 %v209_v28  ;;  %423 = vmatpush.msrb.mxu3 %v376_v9  ;;  %v359_v28 = vld [vmem:[#allocation5 + $0x388] sm:$0xff] }
  0x4c   :  { %292 = vmatpush.msrb.mxu0 %v205_v30  ;;  %v355_v30 = vld [vmem:[#allocation5 + $0x368] sm:$0xff]  ;;  %409 = vmatpush.msrb.mxu2 %v357_v26 }
  0x4d   :  { %312 = vmatpush.msrb.mxu1 %v206_v31  ;;  %424 = vmatpush.msrb.mxu3 %v373_v12  ;;  %v356_v31 = vld [vmem:[#allocation5 + $0x370] sm:$0xff] }
  0x4e   :  { %293 = vmatpush.msrb.mxu0 %v202_v35  ;;  %410 = vmatpush.msrb.mxu2 %v354_v29  ;;  %v250_v35 = vld [vmem:[#allocation7 + $0x3] sm:$0x7] }
  0x4f   :  { %313 = vmatpush.msrb.mxu1 %v203_v36  ;;  %425 = vmatpush.msrb.mxu3 %v370_v15  ;;  %v348_v36 = vld [vmem:[#allocation5 + $0x330] sm:$0xff] }
  0x50   :  { %439 = vmatpush.msra.mxu0 %v389_v62 }
  0x51   :  { %426 = vmatpush.msrb.mxu3 %v367_v18 }
  0x52   :  { %440 = vmatpush.msra.mxu0 %v386_v1 }
  0x53   :  { %427 = vmatpush.msrb.mxu3 %v364_v21 }
  0x54   :  { %441 = vmatpush.msra.mxu0 %v383_v4 }
  0x55   :  { %428 = vmatpush.msrb.mxu3 %v361_v24 }
  0x56   :  { %442 = vmatpush.msra.mxu0 %v380_v7  ;;  %v391_v7 = vld [vmem:[#allocation7 + $0x6] sm:$0x7] }
  0x57   :  { %429 = vmatpush.msrb.mxu3 %v358_v27  ;;  %v393_v8 = vperm.slane %v391_v7, 0  ;;  %v394_v14 = vperm.slane %v391_v7, 1 }
  0x58   :  { %443 = vmatpush.msra.mxu0 %v377_v10 }
  0x59   :  { %430 = vmatpush.msrb.mxu3 %v355_v30 }
  0x5a   :  { %444 = vmatpush.msra.mxu0 %v374_v13 }
  0x5c   :  { %445 = vmatpush.msra.mxu0 %v371_v16 }
  0x5e   :  { %446 = vmatpush.msra.mxu0 %v368_v19  ;;  %v395_v19 = vperm.slane %v391_v7, 2 }
  0x60   :  { %447 = vmatpush.msra.mxu0 %v365_v22 }
  0xab   :  { %v134_v32 = vpop.f32.mrf.mxu0 }
  0xac   :  { %v135_v33 = vadd.f32 %v134_v32, %v111_v25  ;;  %v154_v41 = vpop.f32.mrf.mxu1  ;;  %v362_v25 = vld [vmem:[#allocation5 + $0x3a0] sm:$0xff]  ;;  %v351_v32 = vld [vmem:[#allocation5 + $0x348] sm:$0xff] }
  0xad   :  { %v155_v42 = vadd.f32 %v154_v41, %v112_v40  ;;  %448 = vmatpush.msra.mxu0 %v362_v25  ;;  %411 = vmatpush.msrb.mxu2 %v351_v32  ;;  %v345_v40 = vld [vmem:[#allocation5 + $0x318] sm:$0xff]  ;;  %v346_v41 = vld [vmem:[#allocation5 + $0x320] sm:$0xff] }
  0xae   :  { %v501_v37 = vmul.f32 -1.442695, %v135_v33  ;;  %v352_v33 = vld [vmem:[#allocation5 + $0x350] sm:$0xff] }
  0xaf   :  { %v196_v47 = vmax.f32 %v155_v42, 0.0  ;;  %449 = vmatpush.msra.mxu0 %v359_v28  ;;  %431 = vmatpush.msrb.mxu3 %v352_v33  ;;  %v347_v42 = vld [vmem:[#allocation5 + $0x328] sm:$0xff] }
  0xb0   :  { %512 = vpow2.f32 %v501_v37  ;;  %v349_v37 = vld [vmem:[#allocation5 + $0x338] sm:$0xff]  ;;  %412 = vmatpush.msrb.mxu2 %v348_v36 }
  0xb1   :  { %450 = vmatpush.msra.mxu0 %v356_v31  ;;  %432 = vmatpush.msrb.mxu3 %v349_v37 }
  0xb2   :  { %413 = vmatpush.msrb.mxu2 %v345_v40 }
  0xb3   :  { %v174_v45 = vpop.f32.mrf.mxu2  ;;  %451 = vmatpush.msra.mxu0 %v353_v34  ;;  %433 = vmatpush.msrb.mxu3 %v346_v41 }
  0xb4   :  { %v175_v48 = vadd.f32 %v174_v45, %v113_v43  ;;  %v343_v45 = vld [vmem:[#allocation5 + $0x308] sm:$0xff] }
  0xb5   :  { %434 = vmatpush.msrb.mxu3 %v343_v45 }
  0xb6   :  { %v513_v38 = vpop.eup %512  ;;  %v197_v54 = vsub.f32 %v196_v47, %v175_v48  ;;  %v344_v47 = vld [vmem:[#allocation5 + $0x310] sm:$0xff] }
  0xb7   :  { %v180_v39 = vadd.f32 1.0, %v513_v38  ;;  %v252_v38 = vperm.slane %v250_v35, 0 }
  0xb9   :  { %514 = vrcp.f32 %v180_v39  ;;  %v192_v50 = vand.u32 2147483648, %v180_v39  ;;  %v190_v52 = vand.u32 2147483647, %v180_v39  ;;  %vm186_vm1 = vweird.f32 %v180_v39 }
  0xbb   :  { %v193_v55 = vor.u32 1.1754944e-38, %v192_v50  ;;  %vm191_vm3 = vcmp.eq.f32.partialorder %v190_v52, 8.507059e+37 }
  0xbf   :  { %v515_v44 = vpop.eup %514 }
  0xc0   :  { %v182_v46 = vmul.f32 %v515_v44, %v180_v39  ;;  %vm187_vm0 = vweird.f32 %v515_v44  ;;  %v350_v39 = vld [vmem:[#allocation5 + $0x340] sm:$0xff] }
  0xc1   :  { %vm188_vm2 = vmor %vm186_vm1, %vm187_vm0  ;;  %452 = vmatpush.msra.mxu0 %v350_v39 }
  0xc2   :  { %v183_v49 = vsub.f32 1.0, %v182_v46 }
  0xc3   :  { %453 = vmatpush.msra.mxu0 %v347_v42 }
  0xc4   :  { %v184_v51 = vmul.f32 %v515_v44, %v183_v49 }
  0xc5   :  { %454 = vmatpush.msra.mxu0 %v344_v47 }
  0xc6   :  { %v185_v53 = vadd.f32 %v515_v44, %v184_v51  ;;  %v253_v51 = vperm.slane %v250_v35, 1 }
  0xc8   :  { %v189_v56 = vsel %vm188_vm2, %v515_v44, %v185_v53  ;;  %v342_v44 = vld [vmem:[#allocation5 + $0x300] sm:$0xff] }
  0xc9   :  { %v194_v57 = vsel %vm191_vm3, %v193_v55, %v189_v56  ;;  %414 = vmatpush.msrb.mxu2 %v342_v44  ;;  %v254_v56 = vperm.slane %v250_v35, 2 }
  0xca   :  { %v198_v58 = vmul.f32 %v197_v54, %v194_v57 }
  0xcc   :  { %v199_v59 = vadd.f32 %v198_v58, %v175_v48 }
  0xce   :  { %274 = vmatmul.f32.vlgmr.msra.gmra.mxu3 %v199_v59  ;;  %294 = vmatmul.f32.vlgmr.msrb.gmra.mxu0 %v199_v59 }
  0xcf   :  { %314 = vmatmul.f32.vlgmr.msrb.gmra.mxu1 %v199_v59 }
 0x14b   :  { %v295_v52 = vpop.f32.mrf.mxu0 }
 0x14c   :  { %v296_v54 = vadd.f32 %v295_v52, %v253_v51  ;;  %v315_v58 = vpop.f32.mrf.mxu1 }
 0x14d   :  { %v316_v63 = vadd.f32 %v315_v58, %v254_v56 }
 0x14e   :  { %v337_v60 = vmax.f32 %v296_v54, 0.0 }
 0x150   :  { %v338_v2 = vsub.f32 %v337_v60, %v316_v63 }
 0x151   :  { %v275_v43 = vpop.f32.mrf.mxu3 }
 0x152   :  { %v276_v46 = vadd.f32 %v275_v43, %v252_v38 }
 0x154   :  { %v502_v48 = vmul.f32 -1.442695, %v276_v46 }
 0x156   :  { %516 = vpow2.f32 %v502_v48 }
 0x15c   :  { %v517_v49 = vpop.eup %516 }
 0x15d   :  { %v321_v50 = vadd.f32 1.0, %v517_v49 }
 0x15f   :  { %518 = vrcp.f32 %v321_v50  ;;  %v333_v59 = vand.u32 2147483648, %v321_v50  ;;  %v331_v62 = vand.u32 2147483647, %v321_v50  ;;  %vm327_vm5 = vweird.f32 %v321_v50 }
 0x161   :  { %v334_v1 = vor.u32 1.1754944e-38, %v333_v59  ;;  %vm332_vm7 = vcmp.eq.f32.partialorder %v331_v62, 8.507059e+37 }
 0x165   :  { %v519_v53 = vpop.eup %518 }
 0x166   :  { %v323_v55 = vmul.f32 %v519_v53, %v321_v50  ;;  %vm328_vm4 = vweird.f32 %v519_v53 }
 0x167   :  { %vm329_vm6 = vmor %vm327_vm5, %vm328_vm4 }
 0x168   :  { %v324_v57 = vsub.f32 1.0, %v323_v55 }
 0x16a   :  { %v325_v61 = vmul.f32 %v519_v53, %v324_v57 }
 0x16c   :  { %v326_v0 = vadd.f32 %v519_v53, %v325_v61 }
 0x16e   :  { %v330_v3 = vsel %vm329_vm6, %v519_v53, %v326_v0 }
 0x16f   :  { %v335_v4 = vsel %vm332_vm7, %v334_v1, %v330_v3 }
 0x170   :  { %v339_v5 = vmul.f32 %v338_v2, %v335_v4 }
 0x172   :  { %v340_v6 = vadd.f32 %v339_v5, %v316_v63 }
 0x174   :  { %415 = vmatmul.f32.vlgmr.msrb.gmra.mxu2 %v340_v6  ;;  %435 = vmatmul.f32.vlgmr.msrb.gmra.mxu3 %v340_v6 }
 0x175   :  { %455 = vmatmul.f32.vlgmr.msra.gmra.mxu0 %v340_v6 }
 0x1f2   :  { %v456_v21 = vpop.f32.mrf.mxu0 }
 0x1f3   :  { %v457_v26 = vadd.f32 %v456_v21, %v395_v19 }
 0x1f7   :  { %v416_v9 = vpop.f32.mrf.mxu2  ;;  %v436_v15 = vpop.f32.mrf.mxu3 }
 0x1f8   :  { %v417_v10 = vadd.f32 %v416_v9, %v393_v8  ;;  %v437_v18 = vadd.f32 %v436_v15, %v394_v14 }
 0x1fa   :  { %v503_v11 = vmul.f32 -1.442695, %v417_v10  ;;  %v478_v25 = vmax.f32 %v437_v18, 0.0 }
 0x1fc   :  { %520 = vpow2.f32 %v503_v11  ;;  %v479_v30 = vsub.f32 %v478_v25, %v457_v26 }
 0x202   :  { %v521_v12 = vpop.eup %520 }
 0x203   :  { %v462_v13 = vadd.f32 1.0, %v521_v12 }
 0x205   :  { %522 = vrcp.f32 %v462_v13  ;;  %v474_v22 = vand.u32 2147483648, %v462_v13  ;;  %v472_v24 = vand.u32 2147483647, %v462_v13  ;;  %vm468_vm9 = vweird.f32 %v462_v13 }
 0x207   :  { %v475_v28 = vor.u32 1.1754944e-38, %v474_v22  ;;  %vm473_vm11 = vcmp.eq.f32.partialorder %v472_v24, 8.507059e+37 }
 0x20b   :  { %v523_v16 = vpop.eup %522 }
 0x20c   :  { %v464_v17 = vmul.f32 %v523_v16, %v462_v13  ;;  %vm469_vm8 = vweird.f32 %v523_v16 }
 0x20d   :  { %vm470_vm10 = vmor %vm468_vm9, %vm469_vm8 }
 0x20e   :  { %v465_v20 = vsub.f32 1.0, %v464_v17 }
 0x210   :  { %v466_v23 = vmul.f32 %v523_v16, %v465_v20 }
 0x212   :  { %v467_v27 = vadd.f32 %v523_v16, %v466_v23 }
 0x214   :  { %v471_v29 = vsel %vm470_vm10, %v523_v16, %v467_v27 }
 0x215   :  { %v476_v31 = vsel %vm473_vm11, %v475_v28, %v471_v29 }
 0x216   :  { %v480_v32 = vmul.f32 %v479_v30, %v476_v31 }
 0x218   :  { %v481_v33 = vadd.f32 %v480_v32, %v457_v26 }
 0x21a   :  { %482 = vst [vmem:[#allocation8] sm:$0xff] %v481_v33 }
 0x21b   :  { %493 = dma.vmem_to_hbm [thread:$0]  %s489_s2, 128, %s491_s5, [#allocation4]  }
 0x21c   :  { %624 = dma.done.wait [#allocation4], 128  }
 0x21d   :  { %625 = vsyncadd [#allocation4], 4294967168 }
 0x21e   :  { %498 = vsyncpa [#allocation3], 1 }
 0x21f   :  { %499 = vsyncpa [#allocation6], 1 }
 0x220   :  { %500 = vsyncpa [#allocation4], 1 }

</bundles_post_ra>
